<compile_context>
chip_gen: v6e
topology: v6e:2x2x1
jax: 0.10.0
libtpu: 0.0.40
codegen_flags: <defaults>
</compile_context>

<pallas_src>
import functools

import jax
import jax.numpy as jnp
from jax.experimental import pallas as pl
from jax.experimental.pallas import tpu as pltpu

_EPS = 1e-7
_PACKED_TILE_CAP = 2048        # packed (128-lane) rows per grid step
_ROWWISE_TILE_CAP = 4096       # original rows per grid step (C > 128 fallback)
_ROWWISE_VMEM_BUDGET = 16 * 1024 * 1024


def _round_up(x, m):
    return ((x + m - 1) // m) * m


def _next_divisor_of_128(c):
    for d in (1, 2, 4, 8, 16, 32, 64, 128):
        if d >= c:
            return d
    return 128


def _pick_tile(n_rows, cap):
    """Rows per grid step: multiple of 8, biggest tile under `cap`, and at least
    2 grid steps when possible so v7x's two TensorCores both get work."""
    if n_rows <= 8:
        return max(n_rows, 1)                       # full-extent block
    steps = max(2, pl.cdiv(n_rows, cap))
    return min(_round_up(pl.cdiv(n_rows, steps), 8), cap)


def _precision_for(*arrays):
    # f32 inputs: DMA budget per block comfortably covers a 6-pass (exact) f32
    # matmul on all generations -> HIGHEST.  bf16/f16 inputs: halve the MXU
    # passes so the vex slots stay under the smaller DMA budget on v6e/v7x.
    itemsize = max(jnp.dtype(a.dtype).itemsize for a in arrays)
    return jax.lax.Precision.HIGHEST if itemsize >= 4 else jax.lax.Precision.HIGH


# ---------------------------------------------------------------------------
# Kernels
# ---------------------------------------------------------------------------
def _packed_kernel(yt_ref, yp_ref, w_ref, out_ref, *, precision):
    """Lane-packed path: (tile, 128) blocks holding R = 128 // Cp rows each.

    w_ref is a constant (128, R) selector*weight matrix with
    W[r*Cp + c, r] = balance_weight[c]; the dot performs both the class
    weighting and the per-row segment reduction on the otherwise idle MXU.
    The contraction only mixes lanes within a packed row, so garbage rows of a
    grid tail block can never contaminate retained rows."""
    p = jnp.clip(yp_ref[...].astype(jnp.float32), _EPS, 1.0 - _EPS)
    weighted = yt_ref[...].astype(jnp.float32) * jnp.log(p)        # full 128 lanes
    out_ref[...] = -jnp.dot(weighted, w_ref[...],
                            precision=precision,
                            preferred_element_type=jnp.float32)


def _rowwise_kernel(yt_ref, yp_ref, w_ref, out_ref):
    """Fallback for C > 128: (tile, C) blocks, reduce over the class (lane) axis."""
    p = jnp.clip(yp_ref[...].astype(jnp.float32), _EPS, 1.0 - _EPS)
    weighted = yt_ref[...].astype(jnp.float32) * jnp.log(p) * w_ref[...]
    out_ref[...] = -jnp.sum(weighted, axis=-1, keepdims=True)


# ---------------------------------------------------------------------------
# Wrappers
# ---------------------------------------------------------------------------
def _costs_lane_packed(y_true, y_pred, bw, N, C):
    Cp = _next_divisor_of_128(C)
    R = 128 // Cp
    row_pad = (R - N % R) % R
    col_pad = Cp - C
    if row_pad or col_pad:
        # <= R-1 pad rows / Cp-C pad cols; zeroed y_true (and bw) make their
        # contribution exactly 0, and pad rows are sliced off below anyway.
        # TODO(synk): this pad is a full-array copy; it never triggers for the
        # common C=8 / N % 16 == 0 case, which runs copy-free.
        y_true = jnp.pad(y_true, ((0, row_pad), (0, col_pad)))
        y_pred = jnp.pad(y_pred, ((0, row_pad), (0, col_pad)))
        bw = jnp.pad(bw, (0, col_pad))
    n_packed = (N + row_pad) // R
    yt = y_true.reshape(n_packed, 128)      # row-major contiguous -> bitcast, no copy
    yp = y_pred.reshape(n_packed, 128)

    # Selector * balance-weight matrix: W[r*Cp + c, r] = bw[c], else 0.
    w = (jnp.repeat(jnp.eye(R, dtype=jnp.float32), Cp, axis=0)
         * jnp.tile(bw, R)[:, None])                                 # (128, R)

    tile = _pick_tile(n_packed, _PACKED_TILE_CAP)
    grid = pl.cdiv(n_packed, tile)
    in_bytes = tile * 128 * (jnp.dtype(y_true.dtype).itemsize
                             + jnp.dtype(y_pred.dtype).itemsize)
    vmem_limit = int(min(max(4 * (in_bytes + tile * R * 4) + (2 << 20), 16 << 20),
                         48 << 20))

    kernel = functools.partial(_packed_kernel,
                               precision=_precision_for(y_true, y_pred))
    out = pl.pallas_call(
        kernel,
        out_shape=jax.ShapeDtypeStruct((n_packed, R), jnp.float32),
        grid_spec=pltpu.PrefetchScalarGridSpec(
            num_scalar_prefetch=0,
            grid=(grid,),
            in_specs=[
                pl.BlockSpec((tile, 128), lambda i: (i, 0)),
                pl.BlockSpec((tile, 128), lambda i: (i, 0)),
                pl.BlockSpec((128, R), lambda i: (0, 0)),
            ],
            out_specs=pl.BlockSpec((tile, R), lambda i: (i, 0)),
        ),
        compiler_params=pltpu.CompilerParams(
            dimension_semantics=("parallel",),
            vmem_limit_bytes=vmem_limit,
        ),
    )(yt, yp, w)
    return out.reshape(n_packed * R)[:N]


def _costs_rowwise(y_true, y_pred, bw, N, C):
    itemsize = (jnp.dtype(y_true.dtype).itemsize
                + jnp.dtype(y_pred.dtype).itemsize)
    cap = max(8, min(_ROWWISE_TILE_CAP,
                     (_ROWWISE_VMEM_BUDGET // (2 * C * itemsize)) // 8 * 8))
    tile = _pick_tile(N, cap)
    grid = pl.cdiv(N, tile)
    vmem_limit = int(min(max(4 * tile * C * itemsize + (4 << 20), 16 << 20),
                         48 << 20))

    out = pl.pallas_call(
        _rowwise_kernel,
        out_shape=jax.ShapeDtypeStruct((N, 1), jnp.float32),
        grid_spec=pltpu.PrefetchScalarGridSpec(
            num_scalar_prefetch=0,
            grid=(grid,),
            in_specs=[
                pl.BlockSpec((tile, C), lambda i: (i, 0)),
                pl.BlockSpec((tile, C), lambda i: (i, 0)),
                pl.BlockSpec((1, C), lambda i: (0, 0)),
            ],
            out_specs=pl.BlockSpec((tile, 1), lambda i: (i, 0)),
        ),
        compiler_params=pltpu.CompilerParams(
            dimension_semantics=("parallel",),
            vmem_limit_bytes=vmem_limit,
        ),
    )(y_true, y_pred, bw.reshape(1, C))
    # TODO(synk): the (tile, 1) output forces masked vst stores; a lane-dense
    # (1, tile) layout would help if this C > 128 fallback ever becomes hot.
    return out.reshape(N)


@jax.jit
def masked_nll_costs(y_true, y_pred, balance_weight):
    """Per-row weighted negative log-likelihood, shape (N,), float32."""
    # TODO(synk): the module contract streams dense y_true; an int-label fast
    # path (in-kernel iota==label or a target-prob gather) would halve HBM
    # reads for hard labels.
    N, C = y_pred.shape
    bw = jnp.asarray(balance_weight, jnp.float32).reshape(C)
    if C <= 128:
        return _costs_lane_packed(y_true, y_pred, bw, N, C)
    return _costs_rowwise(y_true, y_pred, bw, N, C)


class MaskedNLLLossPallas:
    """JAX/Pallas equivalent of the PyTorch MaskedNLLLoss forward pass."""

    def __init__(self, balance_weight=None):
        self.balance_weight = balance_weight

    def __call__(self, y_true, y_pred, sw):
        N, C = y_pred.shape
        bw = (self.balance_weight if self.balance_weight is not None
              else jnp.ones((C,), jnp.float32))
        costs = masked_nll_costs(y_true, y_pred, bw).reshape(-1, 1)   # .view(-1, 1)
        # TODO(synk): torch.masked_select yields a dynamic-shape result, so the
        # compaction runs outside jit on concrete arrays; jit-friendly callers
        # should consume masked_nll_costs() + the mask directly (masked sum /
        # mean) and avoid this host sync.
        mask = jnp.asarray(sw).reshape(-1).astype(bool)
        return costs.reshape(-1)[mask]


def _reference(y_true, y_pred, bw, sw):
    eps = 1e-7
    p = jnp.clip(y_pred, eps, 1.0 - eps)
    costs = -jnp.sum(y_true * jnp.log(p) * bw.reshape(1, -1), axis=-1)
    return costs[jnp.asarray(sw).reshape(-1).astype(bool)]


if __name__ == "__main__":
    key = jax.random.PRNGKey(0)
    batch, seq, num_classes = 2, 8, 8
    N = batch * seq  # 16

    k1, k2, k3 = jax.random.split(key, 3)
    labels = jax.random.randint(k1, (N,), 0, num_classes)
    y_true = jax.nn.one_hot(labels, num_classes, dtype=jnp.float32)        # (N, C)
    logits = jax.random.normal(k2, (N, num_classes), dtype=jnp.float32)
    y_pred = jax.nn.softmax(logits, axis=-1)                               # probabilities
    sw = (jax.random.uniform(k3, (N,)) > 0.3).astype(jnp.int32)            # sample-weight mask

    # Deterministic class balance weights (shape (C,) per module __init__).
    balance_weight = jnp.linspace(0.5, 1.5, num_classes, dtype=jnp.float32)

    loss_mod = MaskedNLLLossPallas(balance_weight=balance_weight)
    out = jax.block_until_ready(loss_mod(y_true, y_pred, sw))
    ref = _reference(y_true, y_pred, balance_weight, sw)
    assert out.shape == ref.shape
    assert jnp.allclose(out, ref, atol=1e-5, rtol=1e-5)

    # Exercise the multi-block grid, the tail block and the pad-to-R path
    # (N2 = 300 is not a multiple of R = 16).
    N2 = 300
    k4, k5, k6 = jax.random.split(jax.random.PRNGKey(1), 3)
    labels2 = jax.random.randint(k4, (N2,), 0, num_classes)
    y_true2 = jax.nn.one_hot(labels2, num_classes, dtype=jnp.float32)
    y_pred2 = jax.nn.softmax(jax.random.normal(k5, (N2, num_classes),
                                               dtype=jnp.float32), axis=-1)
    sw2 = (jax.random.uniform(k6, (N2,)) > 0.5).astype(jnp.int32)
    out2 = jax.block_until_ready(loss_mod(y_true2, y_pred2, sw2))
    ref2 = _reference(y_true2, y_pred2, balance_weight, sw2)
    assert out2.shape == ref2.shape
    assert jnp.allclose(out2, ref2, atol=1e-5, rtol=1e-5)

    print("KERNEL_OK")
</pallas_src>

<mosaic_0001>
module attributes {stable_mosaic.version = 11 : i64} {
  func.func @_packed_kernel(%arg0: i32, %arg1: memref<1x128xf32, #tpu.memory_space<vmem>>, %arg2: memref<1x128xf32, #tpu.memory_space<vmem>>, %arg3: memref<128x16xf32, #tpu.memory_space<vmem>>, %arg4: memref<1x16xf32, #tpu.memory_space<vmem>>) attributes {dimension_semantics = [#tpu.dimension_semantics<parallel>], iteration_bounds = array<i64: 1>, scalar_prefetch = 0 : i64, scratch_operands = 0 : i64, tpu.core_type = #tpu.core_type<tc>, window_params = [{transform_indices = @transform_0, window_bounds = array<i64: 1, 128>}, {transform_indices = @transform_1, window_bounds = array<i64: 1, 128>}, {pipeline_mode = #tpu.pipeline_mode<synchronous>, transform_indices = @transform_2, window_bounds = array<i64: 128, 16>}, {transform_indices = @transform_3, window_bounds = array<i64: 1, 16>}]} {
    %c0 = arith.constant 0 : index
    %c0_0 = arith.constant 0 : index
    %0 = vector.load %arg2[%c0, %c0_0] : memref<1x128xf32, #tpu.memory_space<vmem>>, vector<1x128xf32>
    %cst = arith.constant 1.000000e-07 : f32
    %cst_1 = arith.constant 0.99999988 : f32
    %1 = vector.broadcast %cst : f32 to vector<1x128xf32>
    %2 = arith.maximumf %1, %0 : vector<1x128xf32>
    %3 = vector.broadcast %cst_1 : f32 to vector<1x128xf32>
    %4 = arith.minimumf %3, %2 : vector<1x128xf32>
    %c0_2 = arith.constant 0 : index
    %c0_3 = arith.constant 0 : index
    %5 = vector.load %arg1[%c0_2, %c0_3] : memref<1x128xf32, #tpu.memory_space<vmem>>, vector<1x128xf32>
    %6 = math.log %4 : vector<1x128xf32>
    %7 = arith.mulf %5, %6 : vector<1x128xf32>
    %c0_4 = arith.constant 0 : index
    %c0_5 = arith.constant 0 : index
    %8 = vector.load %arg3[%c0_4, %c0_5] : memref<128x16xf32, #tpu.memory_space<vmem>>, vector<128x16xf32>
    %cst_6 = arith.constant dense<0.000000e+00> : vector<1x16xf32>
    %9 = tpu.matmul %7, %8, %cst_6 {dimension_numbers = #tpu.dot_dimension_numbers<[1], [0], [0], [1], [0, 0, 1, 1], [], []>, precision = #tpu.contract_precision<fp32>} : vector<1x128xf32>, vector<128x16xf32>, vector<1x16xf32> -> vector<1x16xf32>
    %cst_7 = arith.constant 0.000000e+00 : f32
    %10 = vector.broadcast %cst_7 : f32 to vector<1x16xf32>
    %11 = arith.subf %10, %9 : vector<1x16xf32>
    %c0_8 = arith.constant 0 : index
    %c0_9 = arith.constant 0 : index
    %12 = vector.load %arg4[%c0_8, %c0_9] : memref<1x16xf32, #tpu.memory_space<vmem>>, vector<1x16xf32>
    tpu.vector_store %arg4[%c0_8, %c0_9], %11 {strides = array<i32>} : memref<1x16xf32, #tpu.memory_space<vmem>>, vector<1x16xf32>,
    return
  }
  func.func @transform_0(%arg0: i32) -> (i32, i32) {
    %c0_i32 = arith.constant 0 : i32
    %c0_i32_0 = arith.constant 0 : i32
    return %arg0, %c0_i32 : i32, i32
  }
  func.func @transform_1(%arg0: i32) -> (i32, i32) {
    %c0_i32 = arith.constant 0 : i32
    %c0_i32_0 = arith.constant 0 : i32
    return %arg0, %c0_i32 : i32, i32
  }
  func.func @transform_2(%arg0: i32) -> (i32, i32) {
    %c0_i32 = arith.constant 0 : i32
    %c0_i32_0 = arith.constant 0 : i32
    %c0_i32_1 = arith.constant 0 : i32
    return %c0_i32, %c0_i32_0 : i32, i32
  }
  func.func @transform_3(%arg0: i32) -> (i32, i32) {
    %c0_i32 = arith.constant 0 : i32
    %c0_i32_0 = arith.constant 0 : i32
    return %arg0, %c0_i32 : i32, i32
  }
}

</mosaic_0001>

<bundles_post_ra>
// kernel: tile.8
= control target key start
LH: loop header
LB: loop body
LE: loop exit
PB: predicated region body
PF: predicated region fallthrough
CT: control target
= control target key end

     0   :  { %s28_s0 = inlined_call_operand.vmem [shape: f32[8], index: 0, kind: input, shape index: {}]   ;;  %s29_s1 = inlined_call_operand.vmem [shape: f32[16,8], index: 1, kind: output, shape index: {}]  }
   0x1   :  { %v4_v0 = vld [vmem:[%s28_s0] ss:$0 sm:$0xff] }
   0x2   :  { %5 = vst [vmem:[%s29_s1] sm:$0xff] %v4_v0  ;;  %8 = vst [vmem:[%s29_s1 + $0x8] sm:$0xff] %v4_v0 }

// kernel: mul.5
= control target key start
LH: loop header
LB: loop body
LE: loop exit
PB: predicated region body
PF: predicated region fallthrough
CT: control target
= control target key end

     0   :  { %s133_s10 = smov 120   ;;  %s134_s11 = smov 104   ;;  %vm3_vm0 = vcmask 64512   ;;  %vm9_vm1 = vcmask 1048512   ;;  %vm15_vm2 = vcmask 982912   ;;  %vm21_vm3 = vcmask 917312   ;;  %s209_s0 = inlined_call_operand.vmem [shape: f32[16,8], index: 0, kind: input, shape index: {}]   ;;  %s210_s1 = inlined_call_operand.vmem [shape: f32[128], index: 1, kind: output, shape index: {}]  }
   0x1   :  { %v103_v0 = vld [vmem:[%s209_s0 + $0xf] sm:$0x1]   ;;  %v105_v1 = vld [vmem:[%s209_s0 + $0xd] sm:$0x1]   ;;  %v104_v2 = vld [vmem:[%s209_s0 + $0xe] sm:$0x1]  }
   0x2   :  { %7 = vrot.lane.b32.xlu0 %v103_v0, %s133_s10  ;;  %19 = vrot.lane.b32.xlu1 %v105_v1, %s134_s11  ;;  %v106_v3 = vld [vmem:[%s209_s0 + $0xc] sm:$0x1]   ;;  %s135_s16 = smov 112   ;;  %s136_s17 = smov 96   ;;  %v107_v4 = vld [vmem:[%s209_s0 + $0xb] sm:$0x1]  }
   0x3   :  { %v108_v5 = vld [vmem:[%s209_s0 + $0xa] sm:$0x1]   ;;  %v2_v6 = vld [vmem:[%s209_s0] sm:$0x1]   ;;  %s137_s24 = smov 88   ;;  %s138_s25 = smov 80  }
   0x4   :  { %4 = vst.msk [vmem:[#allocation0] sm:$0x1] %vm3_vm0, %v2_v6   ;;  %v109_v7 = vld [vmem:[%s209_s0 + $0x9] sm:$0x1]   ;;  %v110_v8 = vld [vmem:[%s209_s0 + $0x8] sm:$0x1]  }
   0x5   :  { %s139_s30 = smov 72   ;;  %s140_s2 = smov 64   ;;  %v111_v9 = vld [vmem:[%s209_s0 + $0x7] sm:$0x1]   ;;  %v112_v10 = vld [vmem:[%s209_s0 + $0x6] sm:$0x1]  }
   0x6   :  { %13 = vrot.lane.b32.xlu0 %v104_v2, %s135_s16  ;;  %25 = vrot.lane.b32.xlu1 %v106_v3, %s136_s17  ;;  %s141_s7 = smov 56   ;;  %s142_s8 = smov 48   ;;  %v113_v11 = vld [vmem:[%s209_s0 + $0x5] sm:$0x1]   ;;  %v114_v12 = vld [vmem:[%s209_s0 + $0x4] sm:$0x1]  }
   0x7   :  { %s143_s13 = smov 40   ;;  %s144_s14 = smov 32   ;;  %v115_v13 = vld [vmem:[%s209_s0 + $0x3] sm:$0x1]   ;;  %v116_v14 = vld [vmem:[%s209_s0 + $0x2] sm:$0x1]  }
   0x8   :  { %s145_s19 = smov 24   ;;  %s146_s20 = smov 16   ;;  %v117_v15 = vld [vmem:[%s209_s0 + $0x1] sm:$0x1]   ;;  %vm27_vm4 = vcmask 851712   ;;  %vm33_vm5 = vcmask 786112  }
   0x9   :  { %s147_s0 = smov 8   ;;  %vm39_vm6 = vcmask 720512   ;;  %vm45_vm7 = vcmask 654912   ;;  %vm51_vm8 = vcmask 589312   ;;  %vm57_vm9 = vcmask 523712  }
   0xa   :  { %31 = vrot.lane.b32.xlu0 %v107_v4, %s137_s24  ;;  %37 = vrot.lane.b32.xlu1 %v108_v5, %s138_s25  ;;  %vm63_vm10 = vcmask 458112   ;;  %vm69_vm11 = vcmask 392512   ;;  %vm75_vm12 = vcmask 326912   ;;  %vm81_vm13 = vcmask 261312  }
   0xb   :  { %vm87_vm14 = vcmask 195712   ;;  %vm93_vm15 = vcmask 130112  }
   0xe   :  { %43 = vrot.lane.b32.xlu0 %v109_v7, %s139_s30  ;;  %49 = vrot.lane.b32.xlu1 %v110_v8, %s140_s2 }
  0x12   :  { %55 = vrot.lane.b32.xlu0 %v111_v9, %s141_s7  ;;  %61 = vrot.lane.b32.xlu1 %v112_v10, %s142_s8 }
  0x16   :  { %67 = vrot.lane.b32.xlu0 %v113_v11, %s143_s13  ;;  %73 = vrot.lane.b32.xlu1 %v114_v12, %s144_s14 }
  0x1a   :  { %79 = vrot.lane.b32.xlu0 %v115_v13, %s145_s19  ;;  %85 = vrot.lane.b32.xlu1 %v116_v14, %s146_s20 }
  0x1e   :  { %91 = vrot.lane.b32.xlu0 %v117_v15, %s147_s0 }
  0x74   :  { %v8_v16 = vpop.permute.xlu0 %7   ;;  %v20_v17 = vpop.permute.xlu1 %19  }
  0x75   :  { %10 = vst.msk [vmem:[#allocation0] sm:$0x1] %vm9_vm1, %v8_v16  }
  0x78   :  { %v14_v18 = vpop.permute.xlu0 %13   ;;  %v26_v19 = vpop.permute.xlu1 %25  }
  0x79   :  { %16 = vst.msk [vmem:[#allocation0] sm:$0x1] %vm15_vm2, %v14_v18  }
  0x7a   :  { %22 = vst.msk [vmem:[#allocation0] sm:$0x1] %vm21_vm3, %v20_v17  }
  0x7b   :  { %28 = vst.msk [vmem:[#allocation0] sm:$0x1] %vm27_vm4, %v26_v19  }
  0x7c   :  { %v32_v20 = vpop.permute.xlu0 %31   ;;  %v38_v21 = vpop.permute.xlu1 %37  }
  0x7d   :  { %34 = vst.msk [vmem:[#allocation0] sm:$0x1] %vm33_vm5, %v32_v20  }
  0x7e   :  { %40 = vst.msk [vmem:[#allocation0] sm:$0x1] %vm39_vm6, %v38_v21  }
  0x80   :  { %v44_v22 = vpop.permute.xlu0 %43   ;;  %v50_v23 = vpop.permute.xlu1 %49  }
  0x81   :  { %46 = vst.msk [vmem:[#allocation0] sm:$0x1] %vm45_vm7, %v44_v22  }
  0x82   :  { %52 = vst.msk [vmem:[#allocation0] sm:$0x1] %vm51_vm8, %v50_v23  }
  0x84   :  { %v56_v24 = vpop.permute.xlu0 %55   ;;  %v62_v25 = vpop.permute.xlu1 %61  }
  0x85   :  { %58 = vst.msk [vmem:[#allocation0] sm:$0x1] %vm57_vm9, %v56_v24  }
  0x86   :  { %64 = vst.msk [vmem:[#allocation0] sm:$0x1] %vm63_vm10, %v62_v25  }
  0x88   :  { %v68_v26 = vpop.permute.xlu0 %67   ;;  %v74_v27 = vpop.permute.xlu1 %73  }
  0x89   :  { %70 = vst.msk [vmem:[#allocation0] sm:$0x1] %vm69_vm11, %v68_v26  }
  0x8a   :  { %76 = vst.msk [vmem:[#allocation0] sm:$0x1] %vm75_vm12, %v74_v27  }
  0x8c   :  { %v80_v28 = vpop.permute.xlu0 %79   ;;  %v86_v29 = vpop.permute.xlu1 %85  }
  0x8d   :  { %82 = vst.msk [vmem:[#allocation0] sm:$0x1] %vm81_vm13, %v80_v28  }
  0x8e   :  { %88 = vst.msk [vmem:[#allocation0] sm:$0x1] %vm87_vm14, %v86_v29  }
  0x90   :  { %v92_v30 = vpop.permute.xlu0 %91  }
  0x91   :  { %94 = vst.msk [vmem:[#allocation0] sm:$0x1] %vm93_vm15, %v92_v30  }
  0x98   :  { %v99_v31 = vld [vmem:[#allocation0] sm:$0x1] }
  0x99   :  { %102 = vst [vmem:[%s210_s1] sm:$0x1] %v99_v31 }

// kernel: masked_nll_costs.1
= control target key start
LH: loop header
LB: loop body
LE: loop exit
PB: predicated region body
PF: predicated region fallthrough
CT: control target
= control target key end

     0   :  { %v1035_v3 = vmov 0.0   ;;  %vm1036_vm0 = vmmov 0   ;;  %s1478_s0 = inlined_call_operand.vmem [shape: f32[1,128], index: 0, kind: input, shape index: {}]   ;;  %s1479_s1 = inlined_call_operand.vmem [shape: f32[1,128], index: 1, kind: input, shape index: {}]   ;;  %s1480_s2 = inlined_call_operand.vmem [shape: f32[128,16], index: 2, kind: input, shape index: {}]   ;;  %s1481_s3 = inlined_call_operand.hbm [shape: f32[1,16], index: 3, kind: output, shape index: {}]  }
   0x1   :  { %v37_v0 = vld [vmem:[%s1480_s2 + $0x78] sm:$0xff]  ;;  %v36_v1 = vld [vmem:[%s1480_s2 + $0x70] sm:$0xff]  ;;  %v35_v2 = vld [vmem:[%s1480_s2 + $0x68] sm:$0xff]  ;;  %798 = vmatprep.subr.mxu0 %v1035_v3  ;;  %833 = vmatprep.subr.mxu1 %v1035_v3 }
   0x2   :  { %v1068_v4 = vand.u32 4294901760, %v37_v0  ;;  %v1070_v5 = vand.u32 4294901760, %v36_v1  ;;  %v1072_v6 = vand.u32 4294901760, %v35_v2  ;;  %v34_v7 = vld [vmem:[%s1480_s2 + $0x60] sm:$0xff]  ;;  %v33_v8 = vld [vmem:[%s1480_s2 + $0x58] sm:$0xff]  ;;  %v32_v9 = vld [vmem:[%s1480_s2 + $0x50] sm:$0xff]  ;;  %830 = vmatprep.mubr.msk.f32.mxu0 %vm1036_vm0, %v1035_v3  ;;  %865 = vmatprep.mubr.msk.f32.mxu1 %vm1036_vm0, %v1035_v3 }
   0x3   :  { %v1084_v10 = vand.u32 4294901760, %v34_v7  ;;  %v1086_v11 = vand.u32 4294901760, %v33_v8  ;;  %v1088_v12 = vand.u32 4294901760, %v32_v9  ;;  %v31_v13 = vld [vmem:[%s1480_s2 + $0x48] sm:$0xff]  ;;  %v30_v14 = vld [vmem:[%s1480_s2 + $0x40] sm:$0xff]  ;;  %v29_v19 = vld [vmem:[%s1480_s2 + $0x38] sm:$0xff] }
   0x4   :  { %799 = vmatpush3.msra.mxu0 %v1068_v4  ;;  %v1102_v15 = vsub.f32 %v37_v0, %v1068_v4  ;;  %v1105_v16 = vsub.f32 %v36_v1, %v1070_v5  ;;  %v1107_v17 = vand.u32 4294901760, %v31_v13  ;;  %v1110_v18 = vsub.f32 %v35_v2, %v1072_v6  ;;  %v28_v26 = vld [vmem:[%s1480_s2 + $0x30] sm:$0xff] }
   0x5   :  { %800 = vmatprep.subr.mxu0 %v1035_v3  ;;  %v1117_v20 = vsub.f32 %v34_v7, %v1084_v10  ;;  %v1120_v21 = vsub.f32 %v33_v8, %v1086_v11  ;;  %v1126_v25 = vand.u32 4294901760, %v30_v14  ;;  %v1133_v28 = vand.u32 4294901760, %v29_v19 }
   0x6   :  { %801 = vmatpush3.msra.mxu0 %v1070_v5  ;;  %v132_v22 = vand.u32 4294901760, %v1102_v15  ;;  %v139_v23 = vand.u32 4294901760, %v1105_v16  ;;  %v146_v24 = vand.u32 4294901760, %v1110_v18  ;;  %v1137_v30 = vsub.f32 %v32_v9, %v1088_v12 }
   0x7   :  { %802 = vmatprep.subr.mxu0 %v1035_v3  ;;  %v153_v27 = vand.u32 4294901760, %v1117_v20  ;;  %v160_v29 = vand.u32 4294901760, %v1120_v21  ;;  %v1150_v34 = vsub.f32 %v31_v13, %v1107_v17 }
   0x8   :  { %803 = vmatpush3.msra.mxu0 %v1072_v6  ;;  %v133_v31 = vsub.f32 %v1102_v15, %v132_v22  ;;  %v140_v32 = vsub.f32 %v1105_v16, %v139_v23  ;;  %v147_v33 = vsub.f32 %v1110_v18, %v146_v24 }
   0x9   :  { %8 = vsyncpa [#allocation3], 0  ;;  %804 = vmatprep.subr.mxu0 %v1035_v3  ;;  %v1153_v35 = vand.u32 4294901760, %v28_v26  ;;  %v27_v36 = vld [vmem:[%s1480_s2 + $0x28] sm:$0xff]  ;;  %v154_v39 = vsub.f32 %v1117_v20, %v153_v27  ;;  %v167_v40 = vand.u32 4294901760, %v1137_v30  ;;  %v26_v41 = vld [vmem:[%s1480_s2 + $0x20] sm:$0xff]  ;;  %v161_v42 = vsub.f32 %v1120_v21, %v160_v29 }
   0xa   :  { %805 = vmatpush3.msra.mxu0 %v1084_v10  ;;  %v134_v37 = vand.u32 4294901760, %v133_v31  ;;  %v141_v38 = vand.u32 4294901760, %v140_v32  ;;  %v1171_v43 = vsub.f32 %v30_v14, %v1126_v25  ;;  %v148_v44 = vand.u32 4294901760, %v147_v33  ;;  %v15_v48 = vld [vmem:[%s1479_s1] sm:$0x1]  ;;  %v25_v50 = vld [vmem:[%s1480_s2 + $0x18] sm:$0xff] }
   0xb   :  { %806 = vmatprep.subr.mxu0 %v1035_v3  ;;  %v1174_v45 = vand.u32 4294901760, %v27_v36  ;;  %v174_v46 = vand.u32 4294901760, %v1150_v34  ;;  %v1178_v47 = vsub.f32 %v29_v19, %v1133_v28  ;;  %v1185_v49 = vand.u32 4294901760, %v26_v41  ;;  %v24_v54 = vld [vmem:[%s1480_s2 + $0x10] sm:$0xff]  ;;  %v23_v61 = vld [vmem:[%s1480_s2 + $0x8] sm:$0xff]  ;;  %v22_v8 = vld [vmem:[%s1480_s2] sm:$0xff] }
   0xc   :  { %807 = vmatpush3.msra.mxu0 %v1086_v11  ;;  %834 = vmatpush3.msra.mxu1 %v134_v37  ;;  %v155_v51 = vand.u32 4294901760, %v154_v39  ;;  %v168_v52 = vsub.f32 %v1137_v30, %v167_v40  ;;  %v181_v53 = vand.u32 4294901760, %v1171_v43  ;;  %v1199_v55 = vsub.f32 %v28_v26, %v1153_v35 }
   0xd   :  { %808 = vmatprep.subr.mxu0 %v1035_v3  ;;  %835 = vmatprep.subr.mxu1 %v1035_v3  ;;  %v162_v56 = vand.u32 4294901760, %v161_v42  ;;  %v16_v57 = vmax.f32 %v15_v48, 1e-07  ;;  %v175_v58 = vsub.f32 %v1150_v34, %v174_v46  ;;  %v1207_v59 = vand.u32 4294901760, %v25_v50 }
   0xe   :  { %809 = vmatpush3.msra.mxu0 %v1088_v12  ;;  %836 = vmatpush3.msra.mxu1 %v141_v38  ;;  %v188_v60 = vand.u32 4294901760, %v1178_v47  ;;  %v1214_v62 = vsub.f32 %v27_v36, %v1174_v45  ;;  %v1218_v63 = vand.u32 4294901760, %v24_v54  ;;  %v169_v1 = vand.u32 4294901760, %v168_v52 }
   0xf   :  { %810 = vmatprep.subr.mxu0 %v1035_v3  ;;  %837 = vmatprep.subr.mxu1 %v1035_v3  ;;  %v17_v0 = vmin.f32 %v16_v57, 0.9999999  ;;  %v182_v2 = vsub.f32 %v1171_v43, %v181_v53  ;;  %v195_v7 = vand.u32 4294901760, %v1199_v55  ;;  %v1229_v9 = vsub.f32 %v26_v41, %v1185_v49 }
  0x10   :  { %811 = vmatpush3.msra.mxu0 %v1107_v17  ;;  %838 = vmatpush3.msra.mxu1 %v148_v44  ;;  %v1233_v13 = vand.u32 4294901760, %v23_v61  ;;  %v176_v14 = vand.u32 4294901760, %v175_v58  ;;  %v189_v19 = vsub.f32 %v1178_v47, %v188_v60  ;;  %v202_v26 = vand.u32 4294901760, %v1214_v62 }
  0x11   :  { %812 = vmatprep.subr.mxu0 %v1035_v3  ;;  %839 = vmatprep.subr.mxu1 %v1035_v3  ;;  %1011 = vlog2.f32 %v17_v0  ;;  %v1241_v31 = vsub.f32 %v25_v50, %v1207_v59  ;;  %v1245_v32 = vand.u32 4294901760, %v22_v8  ;;  %v183_v33 = vand.u32 4294901760, %v182_v2  ;;  %v18_v2 = vld [vmem:[%s1478_s0] sm:$0x1]  ;;  %s1037_s0 = smov [#allocation2]  }
  0x12   :  { %813 = vmatpush3.msra.mxu0 %v1126_v25  ;;  %840 = vmatpush3.msra.mxu1 %v155_v51  ;;  %v196_v36 = vsub.f32 %v1199_v55, %v195_v7  ;;  %v209_v37 = vand.u32 4294901760, %v1229_v9  ;;  %v1253_v38 = vsub.f32 %v24_v54, %v1218_v63  ;;  %v190_v39 = vand.u32 4294901760, %v189_v19  ;;  %s688_s19 = sshll.u32 %s1037_s0, 4  ;;  %s689_s19 = int_to_ptr.vmem [resolvable:$true] %s688_s19 }
  0x13   :  { %814 = vmatprep.subr.mxu0 %v1035_v3  ;;  %841 = vmatprep.subr.mxu1 %v1035_v3  ;;  %v203_v41 = vsub.f32 %v1214_v62, %v202_v26  ;;  %v216_v42 = vand.u32 4294901760, %v1241_v31  ;;  %v1263_v44 = vsub.f32 %v23_v61, %v1233_v13  ;;  %v1273_v52 = vsub.f32 %v22_v8, %v1245_v32  ;;  %s1013_s20 = scalar_lea.vmem %s689_s19, 16  ;;  %s1017_s21 = scalar_lea.vmem %s689_s19, 32 }
  0x14   :  { %815 = vmatpush3.msra.mxu0 %v1133_v28  ;;  %842 = vmatpush3.msra.mxu1 %v162_v56  ;;  %v197_v48 = vand.u32 4294901760, %v196_v36  ;;  %v210_v50 = vsub.f32 %v1229_v9, %v209_v37  ;;  %v223_v51 = vand.u32 4294901760, %v1253_v38  ;;  %vm680_vm1 = vcmask 122880   ;;  %p1014_p0 = scmp.ne.s32.totalorder %s689_s19, %s1013_s20  ;;  %p1018_p1 = scmp.lt.s32.totalorder %s689_s19, %s689_s19 }
  0x15   :  { %816 = vmatprep.subr.mxu0 %v1035_v3  ;;  %843 = vmatprep.subr.mxu1 %v1035_v3  ;;  %v204_v54 = vand.u32 4294901760, %v203_v41  ;;  %v217_v56 = vsub.f32 %v1241_v31, %v216_v42  ;;  %v230_v57 = vand.u32 4294901760, %v1263_v44  ;;  %v237_v0 = vand.u32 4294901760, %v1273_v52  ;;  %p1019_p2 = scmp.lt.s32.totalorder %s1017_s21, %s1013_s20 }
  0x16   :  { %817 = vmatpush3.msra.mxu0 %v1153_v35  ;;  %844 = vmatpush3.msra.mxu1 %v169_v1  ;;  %v211_v58 = vand.u32 4294901760, %v210_v50  ;;  %v224_v61 = vsub.f32 %v1253_v38, %v223_v51 }
  0x17   :  { %818 = vmatprep.subr.mxu0 %v1035_v3  ;;  %845 = vmatprep.subr.mxu1 %v1035_v3  ;;  %v218_v8 = vand.u32 4294901760, %v217_v56  ;;  %v238_v36 = vsub.f32 %v1273_v52, %v237_v0  ;;  %p1020_p3 = por %p1019_p2, %p1018_p1 }
  0x18   :  { %819 = vmatpush3.msra.mxu0 %v1174_v45  ;;  %846 = vmatpush3.msra.mxu1 %v176_v14  ;;  %v231_v14 = vsub.f32 %v1263_v44, %v230_v57 }
  0x19   :  { %820 = vmatprep.subr.mxu0 %v1035_v3  ;;  %847 = vmatprep.subr.mxu1 %v1035_v3  ;;  %v239_v50 = vand.u32 4294901760, %v238_v36  ;;  %p1021_p4 = pnand %p1020_p3, %p1014_p0 }
  0x1a   :  { %821 = vmatpush3.msra.mxu0 %v1185_v49  ;;  %848 = vmatpush3.msra.mxu1 %v183_v33  ;;  %v225_v33 = vand.u32 4294901760, %v224_v61  ;;  %v232_v41 = vand.u32 4294901760, %v231_v14 }
  0x1b   :  { %822 = vmatprep.subr.mxu0 %v1035_v3  ;;  %849 = vmatprep.subr.mxu1 %v1035_v3 }
  0x1c   :  { %823 = vmatpush3.msra.mxu0 %v1207_v59  ;;  %850 = vmatpush3.msra.mxu1 %v190_v39 }
  0x1d   :  { %824 = vmatprep.subr.mxu0 %v1035_v3  ;;  %851 = vmatprep.subr.mxu1 %v1035_v3 }
  0x1e   :  { %825 = vmatpush3.msra.mxu0 %v1218_v63  ;;  %852 = vmatpush3.msra.mxu1 %v197_v48  ;;  %v1012_v1 = vpop.eup %1011 }
  0x1f   :  { %826 = vmatprep.subr.mxu0 %v1035_v3  ;;  %853 = vmatprep.subr.mxu1 %v1035_v3  ;;  %v20_v19 = vmul.f32 0.6931472, %v1012_v1 }
  0x20   :  { %827 = vmatpush3.msra.mxu0 %v1233_v13  ;;  %854 = vmatpush3.msra.mxu1 %v204_v54 }
  0x21   :  { %828 = vmatprep.subr.mxu0 %v1035_v3  ;;  %855 = vmatprep.subr.mxu1 %v1035_v3  ;;  %v21_v39 = vmul.f32 %v20_v19, %v18_v2 }
  0x22   :  { %829 = vmatpush3.msra.mxu0 %v1245_v32  ;;  %856 = vmatpush3.msra.mxu1 %v211_v58 }
  0x23   :  { %857 = vmatprep.subr.mxu1 %v1035_v3  ;;  %868 = vmatprep.subr.mxu0 %v1035_v3  ;;  %v1306_v48 = vand.u32 4294901760, %v21_v39 }
  0x24   :  { %858 = vmatpush3.msra.mxu1 %v218_v8 }
  0x25   :  { %859 = vmatprep.subr.mxu1 %v1035_v3  ;;  %v1310_v54 = vsub.f32 %v21_v39, %v1306_v48 }
  0x26   :  { %860 = vmatpush3.msra.mxu1 %v225_v33 }
  0x27   :  { %861 = vmatprep.subr.mxu1 %v1035_v3  ;;  %v121_v56 = vand.u32 4294901760, %v1310_v54 }
  0x28   :  { %862 = vmatpush3.msra.mxu1 %v232_v41 }
  0x29   :  { %863 = vmatprep.subr.mxu1 %v1035_v3  ;;  %v122_v58 = vsub.f32 %v1310_v54, %v121_v56 }
  0x2a   :  { %864 = vmatpush3.msra.mxu1 %v239_v50 }
  0x2b   :  { %866 = vmatmul.mubr.f32.vlgmr.msra.gmra.mxu1 %v1306_v48  ;;  %903 = vmatprep.subr.mxu1 %v1035_v3  ;;  %v123_v61 = vand.u32 4294901760, %v122_v58 }
  0x2c   :  { %904 = vmatpush3.msra.mxu1 %v1068_v4  ;;  %935 = vmatprep.mubr.msk.f32.mxu1 %vm1036_vm0, %v1035_v3 }
  0x2d   :  { %905 = vmatprep.subr.mxu1 %v1035_v3  ;;  %831 = vmatmul.mubr.f32.vlgmr.msra.gmra.mxu0 %v123_v61 }
  0x2e   :  { %906 = vmatpush3.msra.mxu1 %v1070_v5  ;;  %869 = vmatpush3.msra.mxu0 %v1102_v15 }
  0x2f   :  { %907 = vmatprep.subr.mxu1 %v1035_v3  ;;  %870 = vmatprep.subr.mxu0 %v1035_v3 }
  0x30   :  { %908 = vmatpush3.msra.mxu1 %v1072_v6  ;;  %871 = vmatpush3.msra.mxu0 %v1105_v16 }
  0x31   :  { %909 = vmatprep.subr.mxu1 %v1035_v3  ;;  %872 = vmatprep.subr.mxu0 %v1035_v3 }
  0x32   :  { %910 = vmatpush3.msra.mxu1 %v1084_v10  ;;  %873 = vmatpush3.msra.mxu0 %v1110_v18 }
  0x33   :  { %911 = vmatprep.subr.mxu1 %v1035_v3  ;;  %874 = vmatprep.subr.mxu0 %v1035_v3 }
  0x34   :  { %912 = vmatpush3.msra.mxu1 %v1086_v11  ;;  %875 = vmatpush3.msra.mxu0 %v1117_v20 }
  0x35   :  { %913 = vmatprep.subr.mxu1 %v1035_v3  ;;  %876 = vmatprep.subr.mxu0 %v1035_v3 }
  0x36   :  { %914 = vmatpush3.msra.mxu1 %v1088_v12  ;;  %877 = vmatpush3.msra.mxu0 %v1120_v21 }
  0x37   :  { %915 = vmatprep.subr.mxu1 %v1035_v3  ;;  %878 = vmatprep.subr.mxu0 %v1035_v3 }
  0x38   :  { %916 = vmatpush3.msra.mxu1 %v1107_v17  ;;  %879 = vmatpush3.msra.mxu0 %v1137_v30 }
  0x39   :  { %917 = vmatprep.subr.mxu1 %v1035_v3  ;;  %880 = vmatprep.subr.mxu0 %v1035_v3 }
  0x3a   :  { %918 = vmatpush3.msra.mxu1 %v1126_v25  ;;  %881 = vmatpush3.msra.mxu0 %v1150_v34 }
  0x3b   :  { %919 = vmatprep.subr.mxu1 %v1035_v3  ;;  %882 = vmatprep.subr.mxu0 %v1035_v3 }
  0x3c   :  { %920 = vmatpush3.msra.mxu1 %v1133_v28  ;;  %883 = vmatpush3.msra.mxu0 %v1171_v43 }
  0x3d   :  { %921 = vmatprep.subr.mxu1 %v1035_v3  ;;  %884 = vmatprep.subr.mxu0 %v1035_v3 }
  0x3e   :  { %922 = vmatpush3.msra.mxu1 %v1153_v35  ;;  %885 = vmatpush3.msra.mxu0 %v1178_v47 }
  0x3f   :  { %923 = vmatprep.subr.mxu1 %v1035_v3  ;;  %886 = vmatprep.subr.mxu0 %v1035_v3 }
  0x40   :  { %924 = vmatpush3.msra.mxu1 %v1174_v45  ;;  %887 = vmatpush3.msra.mxu0 %v1199_v55 }
  0x41   :  { %925 = vmatprep.subr.mxu1 %v1035_v3  ;;  %900 = vmatprep.mubr.msk.f32.mxu0 %vm1036_vm0, %v1035_v3 }
  0x42   :  { %888 = vmatprep.subr.mxu0 %v1035_v3  ;;  %926 = vmatpush3.msra.mxu1 %v1185_v49 }
  0x43   :  { %889 = vmatpush3.msra.mxu0 %v1214_v62  ;;  %927 = vmatprep.subr.mxu1 %v1035_v3 }
  0x44   :  { %890 = vmatprep.subr.mxu0 %v1035_v3  ;;  %928 = vmatpush3.msra.mxu1 %v1207_v59 }
  0x45   :  { %891 = vmatpush3.msra.mxu0 %v1229_v9  ;;  %929 = vmatprep.subr.mxu1 %v1035_v3 }
  0x46   :  { %892 = vmatprep.subr.mxu0 %v1035_v3  ;;  %930 = vmatpush3.msra.mxu1 %v1218_v63 }
  0x47   :  { %893 = vmatpush3.msra.mxu0 %v1241_v31  ;;  %931 = vmatprep.subr.mxu1 %v1035_v3 }
  0x48   :  { %894 = vmatprep.subr.mxu0 %v1035_v3  ;;  %932 = vmatpush3.msra.mxu1 %v1233_v13 }
  0x49   :  { %895 = vmatpush3.msra.mxu0 %v1253_v38  ;;  %933 = vmatprep.subr.mxu1 %v1035_v3 }
  0x4a   :  { %896 = vmatprep.subr.mxu0 %v1035_v3  ;;  %934 = vmatpush3.msra.mxu1 %v1245_v32 }
  0x4b   :  { %897 = vmatpush3.msra.mxu0 %v1263_v44  ;;  %936 = vmatmul.mubr.f32.vlgmr.msra.gmra.mxu1 %v121_v56 }
  0x4c   :  { %898 = vmatprep.subr.mxu0 %v1035_v3  ;;  %973 = vmatprep.subr.mxu1 %v1035_v3 }
  0x4d   :  { %899 = vmatpush3.msra.mxu0 %v1273_v52  ;;  %974 = vmatpush3.msra.mxu1 %v1068_v4 }
  0x4e   :  { %901 = vmatmul.mubr.f32.vlgmr.msra.gmra.mxu0 %v1310_v54  ;;  %938 = vmatprep.subr.mxu0 %v1035_v3 }
  0x4f   :  { %939 = vmatpush3.msra.mxu0 %v132_v22  ;;  %975 = vmatprep.subr.mxu1 %v1035_v3 }
  0x50   :  { %940 = vmatprep.subr.mxu0 %v1035_v3  ;;  %976 = vmatpush3.msra.mxu1 %v1070_v5 }
  0x51   :  { %941 = vmatpush3.msra.mxu0 %v139_v23  ;;  %977 = vmatprep.subr.mxu1 %v1035_v3 }
  0x52   :  { %942 = vmatprep.subr.mxu0 %v1035_v3  ;;  %978 = vmatpush3.msra.mxu1 %v1072_v6 }
  0x53   :  { %943 = vmatpush3.msra.mxu0 %v146_v24  ;;  %979 = vmatprep.subr.mxu1 %v1035_v3 }
  0x54   :  { %944 = vmatprep.subr.mxu0 %v1035_v3  ;;  %980 = vmatpush3.msra.mxu1 %v1084_v10 }
  0x55   :  { %945 = vmatpush3.msra.mxu0 %v153_v27  ;;  %981 = vmatprep.subr.mxu1 %v1035_v3 }
  0x56   :  { %946 = vmatprep.subr.mxu0 %v1035_v3  ;;  %982 = vmatpush3.msra.mxu1 %v1086_v11 }
  0x57   :  { %947 = vmatpush3.msra.mxu0 %v160_v29  ;;  %983 = vmatprep.subr.mxu1 %v1035_v3 }
  0x58   :  { %948 = vmatprep.subr.mxu0 %v1035_v3  ;;  %984 = vmatpush3.msra.mxu1 %v1088_v12 }
  0x59   :  { %949 = vmatpush3.msra.mxu0 %v167_v40  ;;  %985 = vmatprep.subr.mxu1 %v1035_v3 }
  0x5a   :  { %950 = vmatprep.subr.mxu0 %v1035_v3  ;;  %986 = vmatpush3.msra.mxu1 %v1107_v17 }
  0x5b   :  { %951 = vmatpush3.msra.mxu0 %v174_v46  ;;  %987 = vmatprep.subr.mxu1 %v1035_v3 }
  0x5c   :  { %952 = vmatprep.subr.mxu0 %v1035_v3  ;;  %988 = vmatpush3.msra.mxu1 %v1126_v25 }
  0x5d   :  { %953 = vmatpush3.msra.mxu0 %v181_v53  ;;  %989 = vmatprep.subr.mxu1 %v1035_v3 }
  0x5e   :  { %954 = vmatprep.subr.mxu0 %v1035_v3  ;;  %990 = vmatpush3.msra.mxu1 %v1133_v28 }
  0x5f   :  { %955 = vmatpush3.msra.mxu0 %v188_v60  ;;  %991 = vmatprep.subr.mxu1 %v1035_v3 }
  0x60   :  { %956 = vmatprep.subr.mxu0 %v1035_v3  ;;  %992 = vmatpush3.msra.mxu1 %v1153_v35 }
  0x61   :  { %957 = vmatpush3.msra.mxu0 %v195_v7  ;;  %993 = vmatprep.subr.mxu1 %v1035_v3 }
  0x62   :  { %958 = vmatprep.subr.mxu0 %v1035_v3  ;;  %994 = vmatpush3.msra.mxu1 %v1174_v45 }
  0x63   :  { %959 = vmatpush3.msra.mxu0 %v202_v26  ;;  %995 = vmatprep.subr.mxu1 %v1035_v3 }
  0x64   :  { %960 = vmatprep.subr.mxu0 %v1035_v3  ;;  %970 = vmatprep.mubr.msk.f32.mxu0 %vm1036_vm0, %v1035_v3 }
  0x65   :  { %961 = vmatpush3.msra.mxu0 %v209_v37  ;;  %996 = vmatpush3.msra.mxu1 %v1185_v49 }
  0x66   :  { %962 = vmatprep.subr.mxu0 %v1035_v3  ;;  %997 = vmatprep.subr.mxu1 %v1035_v3 }
  0x67   :  { %963 = vmatpush3.msra.mxu0 %v216_v42  ;;  %998 = vmatpush3.msra.mxu1 %v1207_v59 }
  0x68   :  { %964 = vmatprep.subr.mxu0 %v1035_v3  ;;  %999 = vmatprep.subr.mxu1 %v1035_v3 }
  0x69   :  { %965 = vmatpush3.msra.mxu0 %v223_v51  ;;  %1000 = vmatpush3.msra.mxu1 %v1218_v63 }
  0x6a   :  { %966 = vmatprep.subr.mxu0 %v1035_v3  ;;  %1001 = vmatprep.subr.mxu1 %v1035_v3 }
  0x6b   :  { %967 = vmatpush3.msra.mxu0 %v230_v57  ;;  %1002 = vmatpush3.msra.mxu1 %v1233_v13 }
  0x6c   :  { %968 = vmatprep.subr.mxu0 %v1035_v3  ;;  %1003 = vmatprep.subr.mxu1 %v1035_v3 }
  0x6d   :  { %969 = vmatpush3.msra.mxu0 %v237_v0  ;;  %1004 = vmatpush3.msra.mxu1 %v1245_v32 }
  0x6e   :  { %971 = vmatmul.mubr.f32.vlgmr.msra.gmra.mxu0 %v1306_v48  ;;  %1005 = vmatprep.mubr.msk.f32.mxu1 %vm1036_vm0, %v1035_v3 }
  0x6f   :  { %1006 = vmatmul.mubr.f32.vlgmr.msra.gmra.mxu1 %v1306_v48 }
  0xeb   :  { %v276_v4 = vpop.f32.mrf.mxu1 }
  0xed   :  { %v867_v5 = vpop.f32.mrf.mxu1  ;;  %v125_v6 = vpop.f32.mrf.mxu0 }
  0xee   :  { %v277_v17 = vadd.f32 %v276_v4, %v125_v6 }
  0xef   :  { %v832_v10 = vpop.f32.mrf.mxu0 }
 0x10b   :  { %v469_v11 = vpop.f32.mrf.mxu1 }
 0x10d   :  { %v937_v12 = vpop.f32.mrf.mxu1 }
 0x10e   :  { %v380_v15 = vpop.f32.mrf.mxu0 }
 0x10f   :  { %v381_v18 = vadd.f32 %v380_v15, %v277_v17 }
 0x110   :  { %v902_v16 = vpop.f32.mrf.mxu0 }
 0x111   :  { %v470_v20 = vadd.f32 %v469_v11, %v381_v18 }
 0x12e   :  { %v588_v21 = vpop.f32.mrf.mxu0 }
 0x12f   :  { %v589_v22 = vadd.f32 %v588_v21, %v470_v20  ;;  %v675_v23 = vpop.f32.mrf.mxu1 }
 0x130   :  { %v972_v24 = vpop.f32.mrf.mxu0 }
 0x131   :  { %v676_v3 = vadd.f32 %v675_v23, %v589_v22  ;;  %v1007_v25 = vpop.f32.mrf.mxu1 }
 0x133   :  { %v679_v27 = vsub.f32 0.0, %v676_v3 }
 0x135   :  { %681 = vst.msk [vmem:[#allocation2] sm:$0x1] %vm680_vm1, %v679_v27 }
 0x136   :  { %1024 = shalt.err (!%p1021_p4)
}
 0x137   :  { %691 = dma.vmem_to_hbm [thread:$0]  %s689_s19, 16, %s1481_s3, [#allocation3]  }
 0x138   :  { %1033 = dma.done.wait [#allocation3], 16  }
 0x139   :  { %1034 = vsyncadd [#allocation3], 4294967280 }
 0x13a   :  { %695 = vsyncpa [#allocation3], 1 }

</bundles_post_ra>
